<compile_context>
chip_gen: v7x
topology: tpu7x:2x2x1
jax: 0.10.0
libtpu: 0.0.40
codegen_flags: <defaults>
</compile_context>

<pallas_src>
import math

import jax
import jax.numpy as jnp
from jax.experimental import pallas as pl
from jax.experimental.pallas import tpu as pltpu


def _round_up(x: int, m: int) -> int:
    return ((x + m - 1) // m) * m


def _sora_kernel(x_ref, a_ref, bt_ref, o_ref, t_ref):
    # x_ref:  (tm, tk)      k-th slice of the input rows
    # a_ref:  (r,  tk)      k-th slice of lora_A
    # bt_ref: (r,  out_pad) B_eff^T = diag(G) @ B^T * scaling (lane-dense, full)
    # o_ref:  (tm, out_pad) output tile (written only on the last k step)
    # t_ref:  (tm, r)       f32 accumulator for T = x @ A^T across the k axis
    @pl.when(pl.program_id(1) == 0)
    def _init():
        t_ref[...] = jnp.zeros_like(t_ref)

    # Partial (tm, r) = x_k @ A_k^T on the MXU, f32 accumulation.
    t_ref[...] += jax.lax.dot_general(
        x_ref[...], a_ref[...], (((1,), (1,)), ((), ())),
        preferred_element_type=jnp.float32,
    )

    @pl.when(pl.program_id(1) == pl.num_programs(1) - 1)
    def _flush():
        # out = T @ B_eff^T ; gate + scaling already folded into B_eff^T.
        o_ref[...] = jax.lax.dot_general(
            t_ref[...].astype(bt_ref.dtype), bt_ref[...],
            (((1,), (0,)), ((), ())),
            preferred_element_type=jnp.float32,
        ).astype(o_ref.dtype)


def sora_linear(x, lora_A, lora_B, lora_G, lora_alpha=16.0, *,
                tm=512, tk=2048):
    """x: [..., in_features] -> [..., out_features] (SoraLinear forward, p=0)."""
    r, in_features = lora_A.shape
    out_features, r_b = lora_B.shape
    assert r_b == r, "lora_B second dim must equal r"
    scaling = lora_alpha / r

    # Fold gate + scaling into a pre-transposed, lane-dense B_eff^T (r, out).
    b_eff_t = (
        lora_B.astype(jnp.float32).T
        * lora_G.astype(jnp.float32).reshape(r, 1)
        * jnp.float32(scaling)
    ).astype(lora_B.dtype)

    lead_shape = x.shape[:-1]
    M = math.prod(lead_shape) if lead_shape else 1
    x2 = x.reshape(M, in_features)

    # ---- per-generation VMEM budget (leave headroom below physical) ----
    try:
        vmem_cap = int(pltpu.get_tpu_info().vmem_capacity_bytes)
    except Exception:
        vmem_cap = 64 * 1024 * 1024
    budget = int(vmem_cap * 0.75)   # ~48 MiB on v7x, ~96 MiB on v5e/v6e

    # ---- tile sizes (sublane/lane granularity, clamp to problem size) ----
    x_item = jnp.dtype(x2.dtype).itemsize
    a_item = jnp.dtype(lora_A.dtype).itemsize
    b_item = jnp.dtype(b_eff_t.dtype).itemsize
    o_item = x_item
    sub = {4: 8, 2: 16, 1: 32}.get(x_item, 8)        # sublane packing per dtype

    out_pad = _round_up(out_features, 128)            # lane-dense output stores

    tm_eff = _round_up(min(tm, _round_up(M, sub)), sub)
    # Keep >=2 parallel row steps when possible (v7x has 2 TensorCores).
    if _round_up(M, tm_eff) // tm_eff < 2 and M > sub:
        tm_eff = _round_up(-(-M // 2), sub)

    tk_eff = _round_up(min(tk, _round_up(in_features, 128)), 128)

    def _vmem_est(tm_e, tk_e):
        return (2 * tm_e * tk_e * x_item            # x tiles (double-buffered)
                + 2 * r * tk_e * a_item             # A slices
                + 2 * r * out_pad * b_item          # B_eff^T (resident)
                + 2 * tm_e * out_pad * o_item       # output tiles
                + tm_e * 128 * 4)                   # (tm, r) f32 scratch (lane-padded)

    # Shrink tiles if the full-width output tile would blow the VMEM budget.
    while _vmem_est(tm_eff, tk_eff) > budget and tk_eff > 128:
        tk_eff = max(128, _round_up(tk_eff // 2, 128))
    while _vmem_est(tm_eff, tk_eff) > budget and tm_eff > sub:
        tm_eff = max(sub, _round_up(tm_eff // 2, sub))

    M_pad = _round_up(M, tm_eff)
    in_pad = _round_up(in_features, tk_eff)

    # ---- zero padding (zeros do not change the matmul results) ----
    if (M_pad, in_pad) != (M, in_features):
        x2 = jnp.pad(x2, ((0, M_pad - M), (0, in_pad - in_features)))
    a_p = lora_A if in_pad == in_features else jnp.pad(
        lora_A, ((0, 0), (0, in_pad - in_features)))
    bt_p = b_eff_t if out_pad == out_features else jnp.pad(
        b_eff_t, ((0, 0), (0, out_pad - out_features)))

    grid = (M_pad // tm_eff, in_pad // tk_eff)

    est = _vmem_est(tm_eff, tk_eff)
    vmem_limit = int(min(budget, max(16 * 1024 * 1024, 2 * est)))

    out = pl.pallas_call(
        _sora_kernel,
        out_shape=jax.ShapeDtypeStruct((M_pad, out_pad), x.dtype),
        grid_spec=pltpu.PrefetchScalarGridSpec(
            num_scalar_prefetch=0,
            grid=grid,
            in_specs=[
                pl.BlockSpec((tm_eff, tk_eff), lambda i, k: (i, k)),  # x tile
                pl.BlockSpec((r, tk_eff), lambda i, k: (0, k)),       # lora_A slice
                pl.BlockSpec((r, out_pad), lambda i, k: (0, 0)),      # B_eff^T (resident)
            ],
            out_specs=pl.BlockSpec((tm_eff, out_pad), lambda i, k: (i, 0)),
            scratch_shapes=[pltpu.VMEM((tm_eff, r), jnp.float32)],
        ),
        compiler_params=pltpu.CompilerParams(
            dimension_semantics=("parallel", "arbitrary"),
            vmem_limit_bytes=vmem_limit,
        ),
    )(x2, a_p, bt_p)

    out = out[:M, :out_features]
    return out.reshape(*lead_shape, out_features)


def init_sora_params(key, in_features, out_features, r=8, dtype=jnp.float32):
    """Deterministic parameter init matching the PyTorch module's __init__."""
    k_a, k_g = jax.random.split(key)
    # nn.init.kaiming_uniform_(lora_A, a=sqrt(5)):
    #   gain = sqrt(2 / (1 + a^2)); bound = gain * sqrt(3 / fan_in)
    a = math.sqrt(5.0)
    gain = math.sqrt(2.0 / (1.0 + a * a))
    bound = gain * math.sqrt(3.0 / in_features)
    lora_A = jax.random.uniform(
        k_a, (r, in_features), dtype=dtype, minval=-bound, maxval=bound)
    lora_B = jnp.zeros((out_features, r), dtype=dtype)
    lora_G = jax.random.normal(k_g, (1, r), dtype=dtype)
    return lora_A, lora_B, lora_G


def _ref(x, A, B, G, alpha):
    scaling = alpha / A.shape[0]
    t = (x @ A.T) * G
    return (t @ B.T) * scaling


if __name__ == "__main__":
    key = jax.random.PRNGKey(0)
    k_x, k_p, k_b, k_x2, k_b2 = jax.random.split(key, 5)

    # Case 1: shapes consistent with the module's typical use.
    batch, seq, in_features, out_features, r = 2, 8, 32, 32, 8
    lora_alpha = 16.0

    x = jax.random.normal(k_x, (batch, seq, in_features), dtype=jnp.float32)
    lora_A, lora_B, lora_G = init_sora_params(k_p, in_features, out_features, r)
    lora_B_nz = 0.02 * jax.random.normal(k_b, (out_features, r), dtype=jnp.float32)

    out_zero = jax.block_until_ready(
        sora_linear(x, lora_A, lora_B, lora_G, lora_alpha))
    out_nz = jax.block_until_ready(
        sora_linear(x, lora_A, lora_B_nz, lora_G, lora_alpha))

    assert out_zero.shape == (batch, seq, out_features)
    assert jnp.allclose(out_zero, _ref(x, lora_A, lora_B, lora_G, lora_alpha),
                        atol=1e-4, rtol=1e-4)
    assert jnp.allclose(out_nz, _ref(x, lora_A, lora_B_nz, lora_G, lora_alpha),
                        atol=1e-4, rtol=1e-4)

    # Case 2: odd shapes to exercise the row/feature padding paths.
    b2, s2, in2, out2 = 3, 5, 40, 24
    x_odd = jax.random.normal(k_x2, (b2, s2, in2), dtype=jnp.float32)
    A2, _, G2 = init_sora_params(k_p, in2, out2, r)
    B2 = 0.05 * jax.random.normal(k_b2, (out2, r), dtype=jnp.float32)
    out_odd = jax.block_until_ready(sora_linear(x_odd, A2, B2, G2, lora_alpha))
    assert out_odd.shape == (b2, s2, out2)
    assert jnp.allclose(out_odd, _ref(x_odd, A2, B2, G2, lora_alpha),
                        atol=1e-4, rtol=1e-4)

    print("KERNEL_OK")
</pallas_src>

<mosaic_0001>
module attributes {stable_mosaic.version = 11 : i64} {
  func.func @_sora_kernel(%arg0: i32, %arg1: i32, %arg2: memref<8x128xf32, #tpu.memory_space<vmem>>, %arg3: memref<8x128xf32, #tpu.memory_space<vmem>>, %arg4: memref<8x128xf32, #tpu.memory_space<vmem>>, %arg5: memref<8x128xf32, #tpu.memory_space<vmem>>, %arg6: memref<8x8xf32, #tpu.memory_space<vmem>>) attributes {dimension_semantics = [#tpu.dimension_semantics<parallel>, #tpu.dimension_semantics<arbitrary>], iteration_bounds = array<i64: 2, 1>, scalar_prefetch = 0 : i64, scratch_operands = 1 : i64, tpu.core_type = #tpu.core_type<tc>, window_params = [{transform_indices = @transform_0, window_bounds = array<i64: 8, 128>}, {transform_indices = @transform_1, window_bounds = array<i64: 8, 128>}, {pipeline_mode = #tpu.pipeline_mode<synchronous>, transform_indices = @transform_2, window_bounds = array<i64: 8, 128>}, {transform_indices = @transform_3, window_bounds = array<i64: 8, 128>}]} {
    %c0_i32 = arith.constant 0 : i32
    %0 = arith.cmpi eq, %arg1, %c0_i32 : i32
    %1 = arith.extui %0 : i1 to i32
    %c0_i32_0 = arith.constant 0 : i32
    %2 = arith.cmpi ne, %1, %c0_i32_0 : i32
    scf.if %2 {
      %cst_10 = arith.constant 0.000000e+00 : f32
      %12 = vector.broadcast %cst_10 : f32 to vector<8x8xf32>
      %c0_11 = arith.constant 0 : index
      %c0_12 = arith.constant 0 : index
      %13 = vector.load %arg6[%c0_11, %c0_12] : memref<8x8xf32, #tpu.memory_space<vmem>>, vector<8x8xf32>
      tpu.vector_store %arg6[%c0_11, %c0_12], %12 {strides = array<i32>} : memref<8x8xf32, #tpu.memory_space<vmem>>, vector<8x8xf32>,
    } else {
    }
    %c0 = arith.constant 0 : index
    %c0_1 = arith.constant 0 : index
    %3 = vector.load %arg6[%c0, %c0_1] : memref<8x8xf32, #tpu.memory_space<vmem>>, vector<8x8xf32>
    %c0_2 = arith.constant 0 : index
    %c0_3 = arith.constant 0 : index
    %4 = vector.load %arg2[%c0_2, %c0_3] : memref<8x128xf32, #tpu.memory_space<vmem>>, vector<8x128xf32>
    %c0_4 = arith.constant 0 : index
    %c0_5 = arith.constant 0 : index
    %5 = vector.load %arg3[%c0_4, %c0_5] : memref<8x128xf32, #tpu.memory_space<vmem>>, vector<8x128xf32>
    %cst = arith.constant dense<0.000000e+00> : vector<8x8xf32>
    %6 = tpu.matmul %4, %5, %cst {dimension_numbers = #tpu.dot_dimension_numbers<[1], [1], [0], [0], [0, 0, 1, 0], [], []>} : vector<8x128xf32>, vector<8x128xf32>, vector<8x8xf32> -> vector<8x8xf32>
    %7 = arith.addf %3, %6 : vector<8x8xf32>
    %c0_6 = arith.constant 0 : index
    %c0_7 = arith.constant 0 : index
    %8 = vector.load %arg6[%c0_6, %c0_7] : memref<8x8xf32, #tpu.memory_space<vmem>>, vector<8x8xf32>
    tpu.vector_store %arg6[%c0_6, %c0_7], %7 {strides = array<i32>} : memref<8x8xf32, #tpu.memory_space<vmem>>, vector<8x8xf32>,
    %c0_i32_8 = arith.constant 0 : i32
    %9 = arith.cmpi eq, %arg1, %c0_i32_8 : i32
    %10 = arith.extui %9 : i1 to i32
    %c0_i32_9 = arith.constant 0 : i32
    %11 = arith.cmpi ne, %10, %c0_i32_9 : i32
    scf.if %11 {
      %c0_10 = arith.constant 0 : index
      %c0_11 = arith.constant 0 : index
      %12 = vector.load %arg6[%c0_10, %c0_11] : memref<8x8xf32, #tpu.memory_space<vmem>>, vector<8x8xf32>
      %c0_12 = arith.constant 0 : index
      %c0_13 = arith.constant 0 : index
      %13 = vector.load %arg4[%c0_12, %c0_13] : memref<8x128xf32, #tpu.memory_space<vmem>>, vector<8x128xf32>
      %cst_14 = arith.constant dense<0.000000e+00> : vector<8x128xf32>
      %14 = tpu.matmul %12, %13, %cst_14 {dimension_numbers = #tpu.dot_dimension_numbers<[1], [0], [0], [1], [0, 0, 1, 1], [], []>} : vector<8x8xf32>, vector<8x128xf32>, vector<8x128xf32> -> vector<8x128xf32>
      %c0_15 = arith.constant 0 : index
      %c0_16 = arith.constant 0 : index
      %15 = vector.load %arg5[%c0_15, %c0_16] : memref<8x128xf32, #tpu.memory_space<vmem>>, vector<8x128xf32>
      tpu.vector_store %arg5[%c0_15, %c0_16], %14 {strides = array<i32>} : memref<8x128xf32, #tpu.memory_space<vmem>>, vector<8x128xf32>,
    } else {
    }
    return
  }
  func.func @transform_0(%arg0: i32, %arg1: i32) -> (i32, i32) {
    %c0_i32 = arith.constant 0 : i32
    return %arg0, %arg1 : i32, i32
  }
  func.func @transform_1(%arg0: i32, %arg1: i32) -> (i32, i32) {
    %c0_i32 = arith.constant 0 : i32
    %c0_i32_0 = arith.constant 0 : i32
    return %c0_i32, %arg1 : i32, i32
  }
  func.func @transform_2(%arg0: i32, %arg1: i32) -> (i32, i32) {
    %c0_i32 = arith.constant 0 : i32
    %c0_i32_0 = arith.constant 0 : i32
    %c0_i32_1 = arith.constant 0 : i32
    return %c0_i32, %c0_i32_0 : i32, i32
  }
  func.func @transform_3(%arg0: i32, %arg1: i32) -> (i32, i32) {
    %c0_i32 = arith.constant 0 : i32
    %c0_i32_0 = arith.constant 0 : i32
    return %arg0, %c0_i32 : i32, i32
  }
}

</mosaic_0001>

<bundles_post_ra>
// kernel: tpu_custom_call.1
= control target key start
LH: loop header
LB: loop body
LE: loop exit
PB: predicated region body
PF: predicated region fallthrough
CT: control target
= control target key end

     0   :  { %8 = vsyncpa [#allocation4], 0  ;;  %s1071_s0 = inlined_call_operand.hbm [shape: f32[16,128], index: 0, kind: input, shape index: {}]   ;;  %s1072_s1 = inlined_call_operand.hbm [shape: f32[8,128], index: 1, kind: input, shape index: {}]   ;;  %s1073_s2 = inlined_call_operand.hbm [shape: f32[8,128], index: 2, kind: input, shape index: {}]   ;;  %s1074_s3 = inlined_call_operand.hbm [shape: f32[16,128], index: 3, kind: output, shape index: {}]  }
   0x1   :  { %10 = vsyncpa [#allocation4 + $0x1], 0 }
   0x2   :  { %11 = vsyncpa [#allocation7], 0 }
   0x3   :  { %12 = vsyncpa [#allocation5], 0 }
   0x4   :  { %14 = vsyncpa [#allocation5 + $0x1], 0  ;;  %s825_s12 = smov 0   ;;  %s827_s13 = smov 0  }
   0x5   :  { %s829_s14 = smov 0   ;;  %s831_s15 = smov 0  }
   0x6   :  { %s833_s16 = smov 0   ;;  %s835_s17 = smov 0  }
   0x7 LB: > { %s508_s18 = sadd.s32 4294967295, %s797_s17   ;;  %s509_s19 = sadd.s32 4294967294, %s797_s17   ;;  %s797_s17 = sphi %s835_s17, %s20_s17   ;;  %s793_s16 = sphi %s833_s16, %s1097_s16   ;;  %s789_s15 = sphi %s831_s15, %s1096_s15   ;;  %s785_s14 = sphi %s829_s14, %s1095_s14   ;;  %s781_s13 = sphi %s827_s13, %s1094_s13   ;;  %s777_s12 = sphi %s825_s12, %s1093_s12  }
   0x8   : > { %p54_p0 = scmp.ne.s32.totalorder %s781_s13, %s777_s12  ;;  %p859_p1 = scmp.eq.s32.totalorder %s508_s18, 0 }
   0x9   : > { %p863_p2 = scmp.eq.s32.totalorder %s508_s18, 1  ;;  %p131_p3 = scmp.eq.s32.totalorder %s509_s19, 1 }
   0xa   : > { %s1079_s20 = scalar_select %p859_p1, 1, 0 }
   0xb   : > { %s1080_s21 = scalar_select %p863_p2, 1, 0 }
   0xc   : > { %p869_p4 = por %p859_p1, %p54_p0  ;;  %p510_p5 = scmp.ge.s32.totalorder %s797_s17, 1 }
   0xd   : > { %p874_p6 = por %p131_p3, %p54_p0  ;;  %p138_p7 = scmp.lt.s32.totalorder %s797_s17, 3 }
   0xe   : > { %s1081_s22 = scalar_select %p869_p4, 1, 0 }
   0xf   : > { %s1082_s23 = scalar_select %p874_p6, 1, 0 }
  0x10   : > { %p879_p8 = pnand %p510_p5, %p138_p7  ;;  %s799_s25 = smov [#allocation6]  }
  0x11   : > { %s153_s26 = sshll.u32 %s799_s25, 4  ;;  %s800_s27 = smov [#allocation8]   ;;  %s154_s26 = int_to_ptr.vmem [resolvable:$true] %s153_s26 }
  0x12   : > { %s1083_s24 = scalar_select %p879_p8, 1, 0 }
  0x13   : > { %p552_p10 = pneg %p879_p8  ;;  %s164_s28 = sshll.u32 %s800_s27, 4  ;;  %s892_s28 = int_to_ptr.vmem [resolvable:$true] %s164_s28 }
  0x14   : > { %s625_s5 = scalar_lea.hbm %s1072_s1, 128 }
  0x15   : > { %p888_p11 = pnand %p552_p10, %p859_p1  ;;  %p626_p12 = scmp.ne.s32.totalorder %s1072_s1, %s625_s5 }
  0x16   : > { %p632_p5 = scmp.lt.u32.totalorder %s625_s5, %s1072_s1 }
  0x17   : > { %p627_p13 = pneg %p888_p11 }
  0x19   : > { %p628_p0 = pnand %p627_p13, %p626_p12 }
  0x1b   : > { %p629_p3 = pneg %p628_p0 }
  0x1d   : > { %p634_p7 = pnand %p632_p5, %p629_p3 }
  0x1f   : > { %637 = shalt.err (!%p634_p7)
}
  0x20   : > { %s638_s10 = scalar_lea.vmem %s154_s26, 128  ;;  %p646_p1 = scmp.lt.s32.totalorder %s154_s26, %s154_s26 }
  0x21   : > { %p639_p10 = scmp.ne.s32.totalorder %s154_s26, %s638_s10  ;;  %p647_p4 = scmp.lt.s32.totalorder %s638_s10, %s638_s10 }
  0x23   : > { %p641_p9 = pnand %p639_p10, %p627_p13  ;;  %p648_p8 = por %p647_p4, %p646_p1 }
  0x25   : > { %p642_p6 = pneg %p641_p9 }
  0x27   : > { %p649_p2 = pnand %p648_p8, %p642_p6 }
  0x29   : > { %652 = shalt.err (!%p649_p2)
}
  0x2a   : > { %555 = dma.hbm_to_vmem [thread:$0]  (!%p888_p11), %s1072_s1, 128, %s154_s26, [#allocation7]  }
  0x2b   : > { %s653_s27 = scalar_lea.hbm %s1073_s2, 128 }
  0x2c   : > { %p654_p9 = scmp.ne.s32.totalorder %s1073_s2, %s653_s27  ;;  %p660_p2 = scmp.lt.u32.totalorder %s653_s27, %s1073_s2 }
  0x2e   : > { %p656_p1 = pnand %p654_p9, %p627_p13 }
  0x30   : > { %p657_p4 = pneg %p656_p1 }
  0x32   : > { %p662_p6 = pnand %p660_p2, %p657_p4 }
  0x34   : > { %665 = shalt.err (!%p662_p6)
}
  0x35   : > { %s666_s26 = scalar_lea.vmem %s892_s28, 128  ;;  %p674_p3 = scmp.lt.s32.totalorder %s892_s28, %s892_s28 }
  0x36   : > { %p667_p8 = scmp.ne.s32.totalorder %s892_s28, %s666_s26  ;;  %p675_p5 = scmp.lt.s32.totalorder %s666_s26, %s666_s26 }
  0x38   : > { %p669_p12 = pnand %p667_p8, %p627_p13  ;;  %p676_p7 = por %p675_p5, %p674_p3 }
  0x3a   : > { %p670_p0 = pneg %p669_p12 }
  0x3c   : > { %p677_p10 = pnand %p676_p7, %p670_p0 }
  0x3e   : > { %680 = shalt.err (!%p677_p10)
}
  0x3f   : > { %558 = dma.hbm_to_vmem [thread:$0]  (!%p888_p11), %s1073_s2, 128, %s892_s28, [#allocation7]  }
  0x40   : > { %s32_s9 = sadd.s32 1, %s793_s16  ;;  %s41_s10 = sadd.s32 1, %s785_s14 }
  0x41   : > { %p34_p13 = scmp.ge.s32.totalorder %s32_s9, 2  ;;  %p48_p9 = scmp.ne.s32.totalorder %s785_s14, %s781_s13 }
  0x42   : > { %p49_p1 = scmp.eq.s32.totalorder %s797_s17, 0  ;;  %p569_p4 = scmp.lt.s32.totalorder %s797_s17, 2 }
  0x43   : > { %s1099_s9 = smov (%p34_p13, %s32_s9), 0  ;;  %p1085_p6 = scmp.ne.s32.totalorder %s1080_s21, 0 }
  0x44   : > { %p50_p2 = por %p49_p1, %p48_p9  ;;  %s36_s11 = ssub.s32 %s793_s16, %s1099_s9 }
  0x45   : > { %p951_p8 = por %p1085_p6, %p48_p9  ;;  %s175_s18 = sand.u32 1, %s785_s14  }
  0x46   : > { %p39_p12 = scmp.eq.s32.totalorder %s36_s11, 0  ;;  %s514_s28 = sshll.u32 %s175_s18, 3 }
  0x47   : > { %s515_s19 = sshll.u32 %s793_s16, 7  ;;  %s179_s21 = scalar_lea.vmem [#allocation3], %s514_s28 }
  0x48   : > { %s960_s25 = scalar_select %p39_p12, %s785_s14, %s41_s10  }
  0x49   : > { %s965_s4 = scalar_lea.hbm %s1071_s0, %s515_s19  ;;  %s187_s5 = sshll.u32 %s179_s21, 4  ;;  %s973_s5 = int_to_ptr.vmem [resolvable:$true] %s187_s5 }
  0x4a   : > { %p969_p11 = pnand %p569_p4, %p50_p2  ;;  %s176_s26 = scalar_lea.sflag [#allocation4], %s175_s18 }
  0x4b   : > { %s681_s7 = scalar_lea.hbm %s965_s4, 128  ;;  %s686_s11 = scalar_lea.hbm %s1071_s0, 256 }
  0x4c   : > { %p682_p0 = scmp.ne.s32.totalorder %s965_s4, %s681_s7  ;;  %p683_p3 = pneg %p969_p11 }
  0x4d   : > { %p687_p10 = scmp.lt.u32.totalorder %s965_s4, %s1071_s0  ;;  %p688_p13 = scmp.lt.u32.totalorder %s686_s11, %s681_s7 }
  0x4e   : > { %p684_p5 = pnand %p683_p3, %p682_p0  ;;  %p690_p1 = scmp.lt.u32.totalorder %s681_s7, %s965_s4 }
  0x4f   : > { %p689_p9 = por %p688_p13, %p687_p10 }
  0x50   : > { %p685_p7 = pneg %p684_p5 }
  0x51   : > { %p691_p4 = por %p690_p1, %p689_p9 }
  0x53   : > { %p692_p2 = pnand %p691_p4, %p685_p7 }
  0x55   : > { %695 = shalt.err (!%p692_p2)
}
  0x56   : > { %s696_s18 = scalar_lea.vmem %s973_s5, 128  ;;  %s801_s27 = smov [#allocation3]  }
  0x57   : > { %p697_p6 = scmp.ne.s32.totalorder %s973_s5, %s696_s18  ;;  %s701_s30 = sshll.u32 %s801_s27, 4  ;;  %s702_s30 = int_to_ptr.vmem [resolvable:$false] %s701_s30 }
  0x58   : > { %s703_s21 = scalar_lea.vmem %s702_s30, 256  ;;  %p704_p5 = scmp.lt.s32.totalorder %s973_s5, %s702_s30 }
  0x59   : > { %p699_p12 = pnand %p697_p6, %p683_p3  ;;  %p705_p10 = scmp.lt.s32.totalorder %s703_s21, %s696_s18 }
  0x5b   : > { %p700_p0 = pneg %p699_p12  ;;  %p706_p13 = por %p705_p10, %p704_p5 }
  0x5d   : > { %p707_p9 = pnand %p706_p13, %p700_p0 }
  0x5f   : > { %710 = shalt.err (!%p707_p9)
}
  0x60   : > { %562 = dma.hbm_to_vmem [thread:$0]  (!%p969_p11), %s965_s4, 128, %s973_s5, %s176_s26  }
  0x61   : > { %p1088_p7 = scmp.ne.s32.totalorder %s1083_s24, 0 }
  0x62   : > { %s1003_s7 = sand.u32 (!%p1088_p7), 1, %s781_s13   ;;  %p1089_p3 = scmp.ne.s32.totalorder (!%p1088_p7), %s1081_s22, 0 }
  0x63   : > { %196 = sbr.rel (%p1088_p7) target bundleno = 564 (0x234), region = 32  ;;  %s517_s8 = sshll.u32 (!%p1088_p7), %s1003_s7, 3 }
  0x64   : > { %s199_s10 = scalar_lea.sflag (!%p1088_p7), [#allocation4], %s1003_s7  ;;  %s202_s11 = scalar_lea.vmem (!%p1088_p7), [#allocation3], %s517_s8 }
  0x6a   : > { %764 = dma.done.wait (%p1089_p3), %s199_s10, 128  }
  0x6b   : > { %766 = vsyncadd (%p1089_p3), %s199_s10, 4294967168  ;;  %p1090_p1 = scmp.ne.s32.totalorder %s1079_s20, 0 }
  0x6d   : > { %768 = dma.done.wait (%p1090_p1), [#allocation7], 256  }
  0x6e   : > { %770 = vsyncadd (%p1090_p1), [#allocation7], 4294967040  ;;  %vm237_vm0 = vcmask 64512   ;;  %v802_v0 = vmov 0.0   ;;  %vm803_vm1 = vmmov 0   ;;  %v241_v1 = vld [vmem:[#allocation6] sm:$0xff] }
  0x6f   : > { %530 = vmatprep.subr.mxu0 %v802_v0  ;;  %532 = vmatprep.mubr.msk.f32.mxu0 %vm803_vm1, %v802_v0  ;;  %238 = vst.msk [vmem:[#allocation2] sm:$0xff] %vm237_vm0, %v802_v0  ;;  %v240_v2 = vld [vmem:[%s202_s11] sm:$0xff]  ;;  %v319_v3 = vld [vmem:[#allocation8] sm:$0xff]  ;;  %s232_s20 = scalar_lea.vmem [#allocation9], %s517_s8  ;;  %s523_s24 = sshll.u32 %s789_s15, 7 }
  0x70   : > { %535 = vmatprep.subr.mxu1 %v802_v0  ;;  %537 = vmatprep.mubr.msk.f32.mxu1 %vm803_vm1, %v802_v0  ;;  %s408_s22 = sshll.u32 %s232_s20, 4  ;;  %s1024_s6 = scalar_lea.hbm %s1074_s3, %s523_s24  ;;  %s1019_s22 = int_to_ptr.vmem [resolvable:$true] %s408_s22 }
  0x71   : > { %531 = vmatpush3.xpose.msra.mxu0 %v241_v1  ;;  %536 = vmatpush3.msra.mxu1 %v319_v3  ;;  %s395_s26 = scalar_lea.sflag [#allocation5], %s1003_s7  ;;  %s711_s28 = scalar_lea.vmem %s1019_s22, 128 }
  0x72   : > { %p712_p11 = scmp.ne.s32.totalorder %s1019_s22, %s711_s28  ;;  %s804_s15 = smov [#allocation9]  }
  0x73   : > { %s715_s19 = sshll.u32 %s804_s15, 4  ;;  %s716_s19 = int_to_ptr.vmem [resolvable:$false] %s715_s19 }
  0x74   : > { %533 = vmatmul.mubr.f32.vlgmr.msra.gmra.mrb[0].mxu0 %v240_v2  ;;  %p713_p4 = pnand %p712_p11, %p951_p8  ;;  %s717_s18 = scalar_lea.vmem %s716_s19, 256 }
  0x75   : > { %p718_p6 = scmp.lt.s32.totalorder %s1019_s22, %s716_s19  ;;  %p719_p12 = scmp.lt.s32.totalorder %s717_s18, %s711_s28 }
  0x76   : > { %v239_v4 = vld [vmem:[#allocation2] sm:$0xff]  ;;  %p714_p2 = pneg %p713_p4 }
  0x77   : > { %p720_p0 = por %p719_p12, %p718_p6 }
  0x79   : > { %p721_p5 = pnand %p720_p0, %p714_p2 }
 0x147   : > { %v308_v5 = vpop.f32.mrb[0].mxu0 }
 0x148   : > { %v312_v6 = vadd.f32 %v308_v5, %v239_v4  ;;  %v534_v7 = vpop.f32.mrb[1].mxu0 }
 0x14a   : > { %314 = vst.msk [vmem:[#allocation2] sm:$0xff] %vm237_vm0, %v312_v6 }
 0x151   : > { %v318_v8 = vld [vmem:[#allocation2] sm:$0xff] }
 0x152   : > { %538 = vmatmul.mubr.msk.f32.vlgmr.msra.gmra.mrb[0].mxu1 %vm237_vm0, %v318_v8 }
 0x225   : > { %v389_v9 = vpop.f32.mrb[0].mxu1 }
 0x226   : > { %393 = vst [vmem:[%s232_s20] sm:$0xff] %v389_v9  ;;  %v539_v10 = vpop.f32.mrb[1].mxu1 }
 0x227   : > { %724 = shalt.err (!%p721_p5)
}
 0x228   : > { %s725_s27 = scalar_lea.hbm %s1024_s6, 128  ;;  %s729_s7 = scalar_lea.hbm %s1074_s3, 256 }
 0x229   : > { %p726_p10 = scmp.ne.s32.totalorder %s1024_s6, %s725_s27  ;;  %p730_p7 = scmp.lt.u32.totalorder %s1024_s6, %s1074_s3 }
 0x22a   : > { %p731_p3 = scmp.lt.u32.totalorder %s729_s7, %s725_s27  ;;  %p733_p11 = scmp.lt.u32.totalorder %s725_s27, %s1024_s6 }
 0x22b   : > { %p727_p13 = pnand %p726_p10, %p951_p8 }
 0x22c   : > { %p732_p1 = por %p731_p3, %p730_p7 }
 0x22d   : > { %p728_p9 = pneg %p727_p13 }
 0x22e   : > { %p734_p4 = por %p733_p11, %p732_p1 }
 0x230   : > { %p735_p2 = pnand %p734_p4, %p728_p9 }
 0x232   : > { %738 = shalt.err (!%p735_p2)
}
 0x233   : > { %550 = dma.vmem_to_hbm [thread:$0]  (%p951_p8), %s1019_s22, 128, %s1024_s6, %s395_s26  }
 0x234 PF: > { %s420_s11 = sand.u32 1, %s777_s12   ;;  %p1091_p6 = scmp.ne.s32.totalorder %s1082_s23, 0 }
 0x235   : > { %p1092_p12 = scmp.ge.s32.totalorder %s797_s17, 2  ;;  %s421_s20 = scalar_lea.sflag [#allocation5], %s420_s11 }
 0x237   : > { %p564_p0 = pnand %p1092_p12, %p1091_p6 }
 0x239   : > { %772 = dma.done.wait (!%p564_p0), %s421_s20, 128  }
 0x23a   : > { %774 = vsyncadd (!%p564_p0), %s421_s20, 4294967168  ;;  %s20_s17 = sadd.s32 1, %s797_s17   ;;  %s1093_s12 = smov %s781_s13 }
 0x23b   : > { %p17_p5 = scmp.ge.s32.totalorder %s20_s17, 4   ;;  %s1094_s13 = smov %s785_s14 }
 0x23c   : > { %s1095_s14 = smov %s960_s25  ;;  %s1096_s15 = smov %s793_s16 }
 0x23d   : > { %s1097_s16 = smov %s1099_s9  ;;  %19 = sbr.rel (!%p17_p5) target bundleno = 7 (0x7), region = 94 }
 0x244   :  { %426 = vsyncpa [#allocation4], 1 }
 0x245   :  { %428 = vsyncpa [#allocation4 + $0x1], 1 }
 0x246   :  { %429 = vsyncpa [#allocation7], 1 }
 0x247   :  { %430 = vsyncpa [#allocation5], 1 }
 0x248   :  { %432 = vsyncpa [#allocation5 + $0x1], 1 }

</bundles_post_ra>
